<compile_context>
chip_gen: v5e
topology: v5e:2x2
jax: 0.10.0
libtpu: 0.0.40
codegen_flags: <defaults>
</compile_context>

<pallas_src>
import functools

import jax
import jax.numpy as jnp
from jax import lax
from jax.experimental import pallas as pl
from jax.experimental.pallas import tpu as pltpu
import numpy as np

_NUM_INFLIGHT = 32   # power of two -> `r % _NUM_INFLIGHT` stays a cheap mask
_LANE = 128
_SUBLANE = 8


def _round_up(x, m):
    return ((x + m - 1) // m) * m


# ---------------------------------------------------------------------------
# Fast path: table resident in VMEM, gather = per-row VMEM load/store.
# ---------------------------------------------------------------------------
def _gather_vmem_kernel(idx_ref, table_ref, out_ref):
    # idx_ref:   SMEM (n_pad,) int32   -- scalar-prefetched flattened indices
    # table_ref: VMEM (V, D)           -- same block every step => resident
    # out_ref:   VMEM (tile_n, D)      -- output block for this grid step
    tile_n = out_ref.shape[0]
    base = pl.program_id(0) * tile_n

    def body(r, carry):
        row = idx_ref[base + r]
        out_ref[pl.ds(r, 1), :] = table_ref[pl.ds(row, 1), :]
        return carry

    lax.fori_loop(0, tile_n, body, 0, unroll=8)


# ---------------------------------------------------------------------------
# Slow path: table stays in HBM, gather = per-row DMA with a rotating window.
# ---------------------------------------------------------------------------
def _gather_hbm_kernel(idx_ref, table_ref, out_ref, sem):
    # idx_ref:   SMEM (n_pad,) int32   -- scalar-prefetched flattened indices
    # table_ref: HBM (V, D) ref (memory_space=pl.ANY), never copied wholesale
    # out_ref:   VMEM (tile_n, D)      -- output block for this grid step
    # sem:       (_NUM_INFLIGHT,) DMA semaphores
    tile_n = out_ref.shape[0]
    base = pl.program_id(0) * tile_n

    def wait_row(r, slot):
        # NOTE: only the (1, D) shape of this descriptor matters for .wait();
        # the source slice is a placeholder.  Keep it in sync with the (1, D)
        # granularity of the copies started below.
        pltpu.make_async_copy(
            table_ref.at[pl.ds(0, 1), :],
            out_ref.at[pl.ds(r, 1), :],
            sem.at[slot]).wait()

    def body(r, carry):
        slot = r % _NUM_INFLIGHT
        # Read the SMEM index *before* the wait: .wait() breaks sst->sld
        # forwarding and would otherwise stall the scalar pipe.
        row = idx_ref[base + r]

        @pl.when(r >= _NUM_INFLIGHT)
        def _():
            wait_row(r - _NUM_INFLIGHT, slot)

        pltpu.make_async_copy(
            table_ref.at[pl.ds(row, 1), :],
            out_ref.at[pl.ds(r, 1), :],
            sem.at[slot]).start()
        return carry

    lax.fori_loop(0, tile_n, body, 0, unroll=4)

    # Epilogue: drain the DMAs still in flight before the block writes back.
    tail = min(_NUM_INFLIGHT, tile_n)

    def drain(r, carry):
        wait_row(r, r % _NUM_INFLIGHT)
        return carry

    lax.fori_loop(tile_n - tail, tile_n, drain, 0, unroll=4)


# ---------------------------------------------------------------------------
# Wrapper
# ---------------------------------------------------------------------------
@functools.partial(jax.jit, static_argnames=("tile_rows", "vmem_budget_bytes"))
def features_embedding(x, offsets, table, *, tile_rows=2048,
                       vmem_budget_bytes=24 * 1024 * 1024):
    """x: (B, F) int; offsets: (F,) int; table: (V, D) -> (B, F, D)."""
    B, F = x.shape
    V, D = table.shape
    N = B * F
    itemsize = table.dtype.itemsize

    # Index arithmetic stays on the scalar/XLA side, not in the vector path.
    idx = (x.astype(jnp.int32) + offsets.astype(jnp.int32)[None, :]).reshape(-1)
    # TODO(synk): PyTorch nn.Embedding raises on out-of-range indices; here we
    # clamp so the gather source always stays inside the table (can hide bugs).
    idx = jnp.clip(idx, 0, V - 1)

    tile_n = min(int(tile_rows), _round_up(N, _SUBLANE))
    if N >= 1024:
        # Keep >= 2 grid steps for large problems so the "parallel" axis can be
        # split across the two v7x TensorCores (neutral on v5e/v6e).
        tile_n = min(tile_n, _round_up((N + 1) // 2, _SUBLANE))
    tile_n = _round_up(tile_n, _SUBLANE)
    n_pad = _round_up(N, tile_n)
    # Padding rows gather table row 0 (wasted but correct); sliced off below.
    idx_pad = jnp.pad(idx, (0, n_pad - N))
    grid = (n_pad // tile_n,)

    # VMEM budget at padded (sublane, lane) layouts: double-buffered output
    # blocks + (fast path) the resident table (counted twice: the pipeline may
    # still double-buffer the constant block).
    lane_d = _round_up(D, _LANE)
    out_buf_bytes = 2 * tile_n * lane_d * itemsize
    table_pad_bytes = _round_up(V, _SUBLANE) * lane_d * itemsize
    use_vmem_table = (2 * table_pad_bytes + out_buf_bytes
                      + (1 << 20)) <= vmem_budget_bytes

    vmem_need = out_buf_bytes + (2 * table_pad_bytes if use_vmem_table else 0)
    vmem_limit = int(min(max(vmem_need + (2 << 20), 16 << 20), 48 << 20))

    # NOTE: whole-array scalar prefetch of idx_pad is fine up to a few hundred
    # thousand rows; for truly huge batches the production fix is a per-tile
    # SMEM-blocked index input instead of scalar prefetch.
    bytes_accessed = (n_pad * 4 + 2 * n_pad * D * itemsize
                      + (V * D * itemsize if use_vmem_table else 0))
    cost = pl.CostEstimate(flops=0, transcendentals=0,
                           bytes_accessed=int(bytes_accessed))
    cparams = pltpu.CompilerParams(dimension_semantics=("parallel",),
                                   vmem_limit_bytes=vmem_limit)

    out_spec = pl.BlockSpec((tile_n, D), lambda t, idx_smem: (t, 0))

    if use_vmem_table:
        kernel = _gather_vmem_kernel
        grid_spec = pltpu.PrefetchScalarGridSpec(
            num_scalar_prefetch=1,                                 # idx -> SMEM
            grid=grid,
            in_specs=[pl.BlockSpec((V, D), lambda t, idx_smem: (0, 0))],
            out_specs=out_spec)
    else:
        kernel = _gather_hbm_kernel
        grid_spec = pltpu.PrefetchScalarGridSpec(
            num_scalar_prefetch=1,                                 # idx -> SMEM
            grid=grid,
            in_specs=[pl.BlockSpec(memory_space=pl.ANY)],          # table: HBM
            out_specs=out_spec,
            scratch_shapes=[pltpu.SemaphoreType.DMA((_NUM_INFLIGHT,))])

    out_flat = pl.pallas_call(
        kernel,
        out_shape=jax.ShapeDtypeStruct((n_pad, D), table.dtype),
        grid_spec=grid_spec,
        compiler_params=cparams,
        cost_estimate=cost,
    )(idx_pad, table)

    return out_flat[:N].reshape(B, F, D)


def init_params(field_dims, embed_dim, key):
    """Deterministic parameter init mirroring the PyTorch __init__."""
    vocab = int(sum(field_dims))
    # torch.nn.init.xavier_uniform_ on a (vocab, embed_dim) weight
    bound = float(np.sqrt(6.0 / (vocab + embed_dim)))
    table = jax.random.uniform(key, (vocab, embed_dim), jnp.float32,
                               minval=-bound, maxval=bound)
    offsets = jnp.asarray(
        np.array((0, *np.cumsum(field_dims)[:-1]), dtype=np.int32))
    return table, offsets


if __name__ == "__main__":
    # --- case 1: the module's toy shapes (B=2, F=4, D=32), fast path --------
    field_dims = (3, 4, 5, 4)        # 4 fields, vocab = 16
    embed_dim = 32
    batch = 2

    key = jax.random.PRNGKey(0)
    k_tab, k_x = jax.random.split(key)
    table, offsets = init_params(field_dims, embed_dim, k_tab)

    maxvals = jnp.asarray(field_dims, dtype=jnp.int32)[None, :]
    x = (jax.random.randint(k_x, (batch, len(field_dims)), 0, 1_000_000,
                            dtype=jnp.int32) % maxvals)

    out = jax.block_until_ready(features_embedding(x, offsets, table))
    ref = table[(x + offsets[None, :])]
    assert out.shape == (batch, len(field_dims), embed_dim)
    np.testing.assert_allclose(np.asarray(out), np.asarray(ref))

    # --- case 2: multi-tile fast path (grid=4) + row padding -----------------
    field_dims2 = (7, 11, 13, 5, 9)
    embed_dim2 = 48
    batch2 = 40                      # N = 200 -> tile 64, grid 4, padded to 256
    k_tab2, k_x2 = jax.random.split(jax.random.PRNGKey(1))
    table2, offsets2 = init_params(field_dims2, embed_dim2, k_tab2)
    maxvals2 = jnp.asarray(field_dims2, dtype=jnp.int32)[None, :]
    x2 = (jax.random.randint(k_x2, (batch2, len(field_dims2)), 0, 1_000_000,
                             dtype=jnp.int32) % maxvals2)
    out2 = jax.block_until_ready(
        features_embedding(x2, offsets2, table2, tile_rows=64))
    ref2 = table2[(x2 + offsets2[None, :])]
    np.testing.assert_allclose(np.asarray(out2), np.asarray(ref2))

    # --- case 3: slow path (HBM DMA gather, rotating window, padding) --------
    out3 = jax.block_until_ready(
        features_embedding(x2, offsets2, table2, tile_rows=64,
                           vmem_budget_bytes=0))
    np.testing.assert_allclose(np.asarray(out3), np.asarray(ref2))

    print("KERNEL_OK")
</pallas_src>

<mosaic_0001>
module attributes {stable_mosaic.version = 11 : i64} {
  func.func @_gather_vmem_kernel(%arg0: i32, %arg1: memref<8xi32, #tpu.memory_space<smem>>, %arg2: memref<16x32xf32, #tpu.memory_space<vmem>>, %arg3: memref<8x32xf32, #tpu.memory_space<vmem>>) attributes {dimension_semantics = [#tpu.dimension_semantics<parallel>], iteration_bounds = array<i64: 1>, scalar_prefetch = 1 : i64, scratch_operands = 0 : i64, tpu.core_type = #tpu.core_type<tc>, window_params = [{pipeline_mode = #tpu.pipeline_mode<synchronous>, transform_indices = @transform_0, window_bounds = array<i64: 16, 32>}, {transform_indices = @transform_1, window_bounds = array<i64: 8, 32>}]} {
    %c8_i32 = arith.constant 8 : i32
    %0 = arith.muli %arg0, %c8_i32 : i32
    %c0_i32 = arith.constant 0 : i32
    %1 = arith.addi %0, %c0_i32 : i32
    %2 = arith.index_cast %1 : i32 to index
    %3 = memref.load %arg1[%2] : memref<8xi32, #tpu.memory_space<smem>>
    %4 = arith.index_cast %3 : i32 to index
    %c0 = arith.constant 0 : index
    %5 = vector.load %arg2[%4, %c0] : memref<16x32xf32, #tpu.memory_space<vmem>>, vector<1x32xf32>
    %6 = arith.index_cast %c0_i32 : i32 to index
    %c0_0 = arith.constant 0 : index
    %7 = vector.load %arg3[%6, %c0_0] : memref<8x32xf32, #tpu.memory_space<vmem>>, vector<1x32xf32>
    tpu.vector_store %arg3[%6, %c0_0], %5 {strides = array<i32>} : memref<8x32xf32, #tpu.memory_space<vmem>>, vector<1x32xf32>,
    %c1_i32 = arith.constant 1 : i32
    %8 = arith.addi %0, %c1_i32 : i32
    %9 = arith.index_cast %8 : i32 to index
    %10 = memref.load %arg1[%9] : memref<8xi32, #tpu.memory_space<smem>>
    %11 = arith.index_cast %10 : i32 to index
    %c0_1 = arith.constant 0 : index
    %12 = vector.load %arg2[%11, %c0_1] : memref<16x32xf32, #tpu.memory_space<vmem>>, vector<1x32xf32>
    %13 = arith.index_cast %c1_i32 : i32 to index
    %c0_2 = arith.constant 0 : index
    %14 = vector.load %arg3[%13, %c0_2] : memref<8x32xf32, #tpu.memory_space<vmem>>, vector<1x32xf32>
    tpu.vector_store %arg3[%13, %c0_2], %12 {strides = array<i32>} : memref<8x32xf32, #tpu.memory_space<vmem>>, vector<1x32xf32>,
    %c2_i32 = arith.constant 2 : i32
    %15 = arith.addi %0, %c2_i32 : i32
    %16 = arith.index_cast %15 : i32 to index
    %17 = memref.load %arg1[%16] : memref<8xi32, #tpu.memory_space<smem>>
    %18 = arith.index_cast %17 : i32 to index
    %c0_3 = arith.constant 0 : index
    %19 = vector.load %arg2[%18, %c0_3] : memref<16x32xf32, #tpu.memory_space<vmem>>, vector<1x32xf32>
    %20 = arith.index_cast %c2_i32 : i32 to index
    %c0_4 = arith.constant 0 : index
    %21 = vector.load %arg3[%20, %c0_4] : memref<8x32xf32, #tpu.memory_space<vmem>>, vector<1x32xf32>
    tpu.vector_store %arg3[%20, %c0_4], %19 {strides = array<i32>} : memref<8x32xf32, #tpu.memory_space<vmem>>, vector<1x32xf32>,
    %c3_i32 = arith.constant 3 : i32
    %22 = arith.addi %0, %c3_i32 : i32
    %23 = arith.index_cast %22 : i32 to index
    %24 = memref.load %arg1[%23] : memref<8xi32, #tpu.memory_space<smem>>
    %25 = arith.index_cast %24 : i32 to index
    %c0_5 = arith.constant 0 : index
    %26 = vector.load %arg2[%25, %c0_5] : memref<16x32xf32, #tpu.memory_space<vmem>>, vector<1x32xf32>
    %27 = arith.index_cast %c3_i32 : i32 to index
    %c0_6 = arith.constant 0 : index
    %28 = vector.load %arg3[%27, %c0_6] : memref<8x32xf32, #tpu.memory_space<vmem>>, vector<1x32xf32>
    tpu.vector_store %arg3[%27, %c0_6], %26 {strides = array<i32>} : memref<8x32xf32, #tpu.memory_space<vmem>>, vector<1x32xf32>,
    %c4_i32 = arith.constant 4 : i32
    %29 = arith.addi %0, %c4_i32 : i32
    %30 = arith.index_cast %29 : i32 to index
    %31 = memref.load %arg1[%30] : memref<8xi32, #tpu.memory_space<smem>>
    %32 = arith.index_cast %31 : i32 to index
    %c0_7 = arith.constant 0 : index
    %33 = vector.load %arg2[%32, %c0_7] : memref<16x32xf32, #tpu.memory_space<vmem>>, vector<1x32xf32>
    %34 = arith.index_cast %c4_i32 : i32 to index
    %c0_8 = arith.constant 0 : index
    %35 = vector.load %arg3[%34, %c0_8] : memref<8x32xf32, #tpu.memory_space<vmem>>, vector<1x32xf32>
    tpu.vector_store %arg3[%34, %c0_8], %33 {strides = array<i32>} : memref<8x32xf32, #tpu.memory_space<vmem>>, vector<1x32xf32>,
    %c5_i32 = arith.constant 5 : i32
    %36 = arith.addi %0, %c5_i32 : i32
    %37 = arith.index_cast %36 : i32 to index
    %38 = memref.load %arg1[%37] : memref<8xi32, #tpu.memory_space<smem>>
    %39 = arith.index_cast %38 : i32 to index
    %c0_9 = arith.constant 0 : index
    %40 = vector.load %arg2[%39, %c0_9] : memref<16x32xf32, #tpu.memory_space<vmem>>, vector<1x32xf32>
    %41 = arith.index_cast %c5_i32 : i32 to index
    %c0_10 = arith.constant 0 : index
    %42 = vector.load %arg3[%41, %c0_10] : memref<8x32xf32, #tpu.memory_space<vmem>>, vector<1x32xf32>
    tpu.vector_store %arg3[%41, %c0_10], %40 {strides = array<i32>} : memref<8x32xf32, #tpu.memory_space<vmem>>, vector<1x32xf32>,
    %c6_i32 = arith.constant 6 : i32
    %43 = arith.addi %0, %c6_i32 : i32
    %44 = arith.index_cast %43 : i32 to index
    %45 = memref.load %arg1[%44] : memref<8xi32, #tpu.memory_space<smem>>
    %46 = arith.index_cast %45 : i32 to index
    %c0_11 = arith.constant 0 : index
    %47 = vector.load %arg2[%46, %c0_11] : memref<16x32xf32, #tpu.memory_space<vmem>>, vector<1x32xf32>
    %48 = arith.index_cast %c6_i32 : i32 to index
    %c0_12 = arith.constant 0 : index
    %49 = vector.load %arg3[%48, %c0_12] : memref<8x32xf32, #tpu.memory_space<vmem>>, vector<1x32xf32>
    tpu.vector_store %arg3[%48, %c0_12], %47 {strides = array<i32>} : memref<8x32xf32, #tpu.memory_space<vmem>>, vector<1x32xf32>,
    %c7_i32 = arith.constant 7 : i32
    %50 = arith.addi %0, %c7_i32 : i32
    %51 = arith.index_cast %50 : i32 to index
    %52 = memref.load %arg1[%51] : memref<8xi32, #tpu.memory_space<smem>>
    %53 = arith.index_cast %52 : i32 to index
    %c0_13 = arith.constant 0 : index
    %54 = vector.load %arg2[%53, %c0_13] : memref<16x32xf32, #tpu.memory_space<vmem>>, vector<1x32xf32>
    %55 = arith.index_cast %c7_i32 : i32 to index
    %c0_14 = arith.constant 0 : index
    %56 = vector.load %arg3[%55, %c0_14] : memref<8x32xf32, #tpu.memory_space<vmem>>, vector<1x32xf32>
    tpu.vector_store %arg3[%55, %c0_14], %54 {strides = array<i32>} : memref<8x32xf32, #tpu.memory_space<vmem>>, vector<1x32xf32>,
    %c8_i32_15 = arith.constant 8 : i32
    return
  }
  func.func @transform_0(%arg0: i32, %arg1: memref<8xi32, #tpu.memory_space<smem>>) -> (i32, i32) {
    %c0_i32 = arith.constant 0 : i32
    %c0_i32_0 = arith.constant 0 : i32
    %c0_i32_1 = arith.constant 0 : i32
    return %c0_i32, %c0_i32_0 : i32, i32
  }
  func.func @transform_1(%arg0: i32, %arg1: memref<8xi32, #tpu.memory_space<smem>>) -> (i32, i32) {
    %c0_i32 = arith.constant 0 : i32
    %c0_i32_0 = arith.constant 0 : i32
    return %arg0, %c0_i32 : i32, i32
  }
}

</mosaic_0001>

<bundles_post_ra>
// kernel: features_embedding.1
= control target key start
LH: loop header
LB: loop body
LE: loop exit
PB: predicated region body
PF: predicated region fallthrough
CT: control target
= control target key end

     0   :  { %s178_s12 = smov [#allocation3]   ;;  %s215_s0 = inlined_call_operand.vmem [shape: s32[8], index: 0, kind: input, shape index: {}]   ;;  %s216_s1 = inlined_call_operand.hbm [shape: f32[16,32], index: 1, kind: input, shape index: {}]   ;;  %s217_s2 = inlined_call_operand.hbm [shape: f32[8,32], index: 2, kind: output, shape index: {}]  }
   0x1   :  { %s8_s11 = sshll.u32 %s215_s0, 4  ;;  %s9_s11 = int_to_ptr.vmem [resolvable:$true] %s8_s11 }
   0x2   :  { %11 = dma.vmem_to_smem %s9_s11, 16, %s178_s12, [#allocation2] }
   0x3   :  { %172 = dma.done.wait [#allocation2], 16 }
   0x4   :  { %173 = vsyncadd [#allocation2], 4294967280 }
   0x5   :  { %14 = sfence }
   0x6   :  { %15 = vsyncpa [#allocation5], 0 }
   0x7   :  { %16 = vsyncpa [#allocation6], 0  ;;  %s21_s15 = sshll.u32 %s216_s1, 4  ;;  %s179_s16 = smov [#allocation4]   ;;  %s22_s15 = int_to_ptr.hbm [resolvable:$true] %s21_s15 }
   0x8   :  { %s23_s17 = sshll.u32 %s179_s16, 4  ;;  %s180_s18 = smov 128   ;;  %s24_s17 = int_to_ptr.vmem [resolvable:$true] %s23_s17 }
   0x9   :  { %s181_s19 = smov 8  }
   0xa   :  { %29 = dma.hbm_to_vmem [thread:$0]  %s22_s15, 256, %s24_s17, [#allocation5], %s180_s18, %s180_s18, %s181_s19  }
   0xb   :  { %174 = dma.done.wait [#allocation5], 256  }
   0xc   :  { %175 = vsyncadd [#allocation5], 4294967040  ;;  %s35_s0 = sld [smem:[#allocation3]]  ;;  %vm38_vm0 = vcmask 253952   ;;  %s182_s29 = smov [#allocation7]  }
   0xd   :  { %s100_s20 = sld [smem:[#allocation3 + $0x1]]  ;;  %s80_s30 = sshll.u32 %s182_s29, 4  ;;  %s81_s30 = int_to_ptr.vmem [resolvable:$true] %s80_s30 }
   0xe   :  { %s101_s21 = sld [smem:[#allocation3 + $0x2]]  ;;  %s82_s6 = sshll.u32 %s217_s2, 4  ;;  %s83_s6 = int_to_ptr.hbm [resolvable:$true] %s82_s6 }
   0xf   :  { %s102_s22 = sld [smem:[#allocation3 + $0x3]] }
  0x10   :  { %s103_s23 = sld [smem:[#allocation3 + $0x4]] }
  0x11   :  { %s104_s24 = sld [smem:[#allocation3 + $0x5]] }
  0x12   :  { %s105_s25 = sld [smem:[#allocation3 + $0x6]]  ;;  %s36_s26 = scalar_lea.vmem [#allocation4], %s35_s0 }
  0x13   :  { %v37_v0 = vld [vmem:[%s36_s26] sm:$0x1]  ;;  %s106_s1 = sld [smem:[#allocation3 + $0x7]]  ;;  %s42_s27 = scalar_lea.vmem [#allocation4], %s100_s20 }
  0x14   :  { %39 = vst.msk [vmem:[#allocation7] sm:$0x1] %vm38_vm0, %v37_v0  ;;  %v43_v1 = vld [vmem:[%s42_s27] sm:$0x1]  ;;  %s47_s28 = scalar_lea.vmem [#allocation4], %s101_s21 }
  0x15   :  { %44 = vst.msk [vmem:[#allocation7 + $0x1] sm:$0x1] %vm38_vm0, %v43_v1  ;;  %v48_v2 = vld [vmem:[%s47_s28] sm:$0x1]  ;;  %s52_s3 = scalar_lea.vmem [#allocation4], %s102_s22 }
  0x16   :  { %49 = vst.msk [vmem:[#allocation7 + $0x2] sm:$0x1] %vm38_vm0, %v48_v2  ;;  %v53_v3 = vld [vmem:[%s52_s3] sm:$0x1]  ;;  %s57_s7 = scalar_lea.vmem [#allocation4], %s103_s23 }
  0x17   :  { %54 = vst.msk [vmem:[#allocation7 + $0x3] sm:$0x1] %vm38_vm0, %v53_v3  ;;  %v58_v4 = vld [vmem:[%s57_s7] sm:$0x1]  ;;  %s62_s8 = scalar_lea.vmem [#allocation4], %s104_s24 }
  0x18   :  { %59 = vst.msk [vmem:[#allocation7 + $0x4] sm:$0x1] %vm38_vm0, %v58_v4  ;;  %v63_v5 = vld [vmem:[%s62_s8] sm:$0x1]  ;;  %s67_s9 = scalar_lea.vmem [#allocation4], %s105_s25 }
  0x19   :  { %64 = vst.msk [vmem:[#allocation7 + $0x5] sm:$0x1] %vm38_vm0, %v63_v5  ;;  %v68_v6 = vld [vmem:[%s67_s9] sm:$0x1]  ;;  %s72_s10 = scalar_lea.vmem [#allocation4], %s106_s1 }
  0x1a   :  { %69 = vst.msk [vmem:[#allocation7 + $0x6] sm:$0x1] %vm38_vm0, %v68_v6  ;;  %v73_v7 = vld [vmem:[%s72_s10] sm:$0x1] }
  0x1b   :  { %74 = vst.msk [vmem:[#allocation7 + $0x7] sm:$0x1] %vm38_vm0, %v73_v7 }
  0x1c   :  { %85 = dma.vmem_to_hbm [thread:$0]  %s81_s30, 128, %s83_s6, [#allocation6]  }
  0x1d   :  { %176 = dma.done.wait [#allocation6], 128  }
  0x1e   :  { %177 = vsyncadd [#allocation6], 4294967168 }
  0x1f   :  { %90 = vsyncpa [#allocation5], 1 }
  0x20   :  { %91 = vsyncpa [#allocation6], 1 }

</bundles_post_ra>
